<compile_context>
chip_gen: v7x
topology: tpu7x:2x2x1
jax: 0.10.0
libtpu: 0.0.40
codegen_flags: <defaults>
</compile_context>

<pallas_src>
import jax
import jax.numpy as jnp
from jax.experimental import pallas as pl
from jax.experimental.pallas import tpu as pltpu

LANE = 128
SUBLANE = 8


def linear_relu_kernel(x_ref, w_ref, b_ref, o_ref):
    # x_ref: (TB, G, 8, 128) f32 VMEM  -- flattened activations, lane-dense
    # w_ref: (N,  G, 8, 128) f32 VMEM  -- fc1.weight rows, lane-dense
    # b_ref: (N,)            f32 SMEM  -- bias scalars
    # o_ref: (TB, N)         f32 VMEM
    TB = x_ref.shape[0]
    G = x_ref.shape[1]
    N = w_ref.shape[0]

    x = x_ref[...]                                           # load once, reuse for all N

    col_ids = jax.lax.broadcasted_iota(jnp.int32, (TB, N), dimension=1)
    out = jnp.zeros((TB, N), dtype=jnp.float32)

    for n in range(N):                                       # N == 2, static unroll; columns independent
        prod = x * w_ref[n][None]                            # (TB, G, 8, 128)  VPU elementwise
        # VPU pre-accumulation: fold the G groups of 8 rows into one (TB, 8, 128) slab.
        folded = prod[:, 0]
        for g in range(1, G):
            folded = folded + prod[:, g]                     # (TB, 8, 128)     VPU adds
        # One XLU lane reduce + one XLU sublane reduce per output column.
        lane_sum = jnp.sum(folded, axis=2, keepdims=True)    # (TB, 8, 1)
        col = jnp.sum(lane_sum, axis=1)                      # (TB, 1)
        col = col + b_ref[n]                                 # bias scalar from SMEM
        out = jnp.where(col_ids == n, col, out)              # place column n (lane select)

    o_ref[...] = jnp.maximum(out, 0.0).astype(o_ref.dtype)   # ReLU, single lane-dense store


def prepare_weight(w):
    """fc1.weight in PyTorch layout (N, K) -> lane-dense (N, K/1024, 8, 128). Do once at init."""
    N, K = w.shape
    G = K // (SUBLANE * LANE)
    assert G * SUBLANE * LANE == K
    return w.reshape(N, G, SUBLANE, LANE)


def baseline_forward(x, w4, b, *, block_b=None):
    """x: (B, C, H, W); w4: prepare_weight(fc1.weight); b: (N,)."""
    B = x.shape[0]
    N, G, _, _ = w4.shape
    K = G * SUBLANE * LANE

    # Row-major flatten (== torch.flatten(x, 1)) regrouped into a lane-dense
    # (B, G, 8, 128) slab.  Contiguous reshape -> free, fused by XLA.
    x4 = x.reshape(B, G, SUBLANE, LANE)

    cost = pl.CostEstimate(
        flops=2 * B * N * K,
        transcendentals=0,
        bytes_accessed=4 * (x4.size + w4.size + b.size + B * N),
    )

    if block_b is None or block_b >= B:
        # Small-batch path: gridless, whole operands resident in VMEM.
        return pl.pallas_call(
            linear_relu_kernel,
            out_shape=jax.ShapeDtypeStruct((B, N), jnp.float32),
            in_specs=[
                pl.BlockSpec(memory_space=pltpu.MemorySpace.VMEM),
                pl.BlockSpec(memory_space=pltpu.MemorySpace.VMEM),
                pl.BlockSpec(memory_space=pltpu.MemorySpace.SMEM),
            ],
            out_specs=pl.BlockSpec(memory_space=pltpu.MemorySpace.VMEM),
            cost_estimate=cost,
        )(x4, w4, b)

    # Batched path: 1-D parallel grid over B (splits across v7x's two TCs).
    assert B % block_b == 0 and block_b % SUBLANE == 0
    return pl.pallas_call(
        linear_relu_kernel,
        out_shape=jax.ShapeDtypeStruct((B, N), jnp.float32),
        grid=(B // block_b,),
        in_specs=[
            pl.BlockSpec((block_b, G, SUBLANE, LANE), lambda i: (i, 0, 0, 0)),
            # Constant index_map: 24 KiB weight tile loaded once, stays resident.
            pl.BlockSpec((N, G, SUBLANE, LANE), lambda i: (0, 0, 0, 0)),
            pl.BlockSpec(memory_space=pltpu.MemorySpace.SMEM),
        ],
        out_specs=pl.BlockSpec((block_b, N), lambda i: (i, 0)),
        compiler_params=pltpu.CompilerParams(dimension_semantics=("parallel",)),
        cost_estimate=cost,
    )(x4, w4, b)


if __name__ == "__main__":
    key = jax.random.PRNGKey(0)
    kx, kw, kb, kx2 = jax.random.split(key, 4)

    # Input consistent with the 3072-feature fc1: (B=2, C=3, H=32, W=32) NCHW.
    B, C, H, W = 2, 3, 32, 32
    K = C * H * W          # 3072
    N = 2

    x = jax.random.normal(kx, (B, C, H, W), dtype=jnp.float32)

    # PyTorch nn.Linear(3072, 2): weight (2, 3072), bias (2,).
    bound = 1.0 / (K ** 0.5)
    w = jax.random.uniform(kw, (N, K), minval=-bound, maxval=bound, dtype=jnp.float32)
    b = jax.random.uniform(kb, (N,), minval=-bound, maxval=bound, dtype=jnp.float32)

    # Hoisted out of the per-call path (done once at "model init").
    w4 = prepare_weight(w)

    fwd = jax.jit(baseline_forward, static_argnames=("block_b",))

    # --- small-batch gridless path ---
    y = jax.block_until_ready(fwd(x, w4, b))
    y_ref = jnp.maximum(x.reshape(B, -1) @ w.T + b[None, :], 0.0)
    assert y.shape == (B, N)
    assert jnp.allclose(y, y_ref, atol=1e-4, rtol=1e-4)

    # --- batched path with a parallel grid over B ---
    B2 = 16
    x2 = jax.random.normal(kx2, (B2, C, H, W), dtype=jnp.float32)
    y2 = jax.block_until_ready(fwd(x2, w4, b, block_b=8))
    y2_ref = jnp.maximum(x2.reshape(B2, -1) @ w.T + b[None, :], 0.0)
    assert y2.shape == (B2, N)
    assert jnp.allclose(y2, y2_ref, atol=1e-4, rtol=1e-4)

    print("KERNEL_OK")
</pallas_src>

<mosaic_0001>
module attributes {stable_mosaic.version = 11 : i64} {
  func.func @linear_relu_kernel(%arg0: memref<2x3x8x128xf32, #tpu.memory_space<vmem>>, %arg1: memref<2x3x8x128xf32, #tpu.memory_space<vmem>>, %arg2: memref<2xf32, #tpu.memory_space<smem>>, %arg3: memref<2x2xf32, #tpu.memory_space<vmem>>) attributes {dimension_semantics = [], scalar_prefetch = 0 : i64, scratch_operands = 0 : i64, tpu.core_type = #tpu.core_type<tc>} {
    %c0 = arith.constant 0 : index
    %c0_0 = arith.constant 0 : index
    %c0_1 = arith.constant 0 : index
    %c0_2 = arith.constant 0 : index
    %0 = vector.load %arg0[%c0, %c0_0, %c0_1, %c0_2] : memref<2x3x8x128xf32, #tpu.memory_space<vmem>>, vector<2x3x8x128xf32>
    %1 = tpu.iota {dimensions = array<i32: 1>} : vector<2x2xi32>
    %cst = arith.constant 0.000000e+00 : f32
    %2 = vector.broadcast %cst : f32 to vector<2x2xf32>
    %c0_3 = arith.constant 0 : index
    %c0_4 = arith.constant 0 : index
    %c0_5 = arith.constant 0 : index
    %c0_6 = arith.constant 0 : index
    %3 = vector.load %arg1[%c0_3, %c0_4, %c0_5, %c0_6] : memref<2x3x8x128xf32, #tpu.memory_space<vmem>>, vector<1x3x8x128xf32>
    %4 = vector.shape_cast %3 : vector<1x3x8x128xf32> to vector<3x8x128xf32>
    %5 = vector.shape_cast %4 : vector<3x8x128xf32> to vector<1x3x8x128xf32>
    %6 = vector.broadcast %5 : vector<1x3x8x128xf32> to vector<2x3x8x128xf32>
    %7 = arith.mulf %0, %6 : vector<2x3x8x128xf32>
    %8 = vector.extract_strided_slice %7 {offsets = [0, 0, 0, 0], sizes = [2, 1, 8, 128], strides = [1, 1, 1, 1]} : vector<2x3x8x128xf32> to vector<2x1x8x128xf32>
    %9 = vector.shape_cast %8 : vector<2x1x8x128xf32> to vector<2x8x128xf32>
    %10 = vector.extract_strided_slice %7 {offsets = [0, 1, 0, 0], sizes = [2, 1, 8, 128], strides = [1, 1, 1, 1]} : vector<2x3x8x128xf32> to vector<2x1x8x128xf32>
    %11 = vector.shape_cast %10 : vector<2x1x8x128xf32> to vector<2x8x128xf32>
    %12 = arith.addf %9, %11 : vector<2x8x128xf32>
    %13 = vector.extract_strided_slice %7 {offsets = [0, 2, 0, 0], sizes = [2, 1, 8, 128], strides = [1, 1, 1, 1]} : vector<2x3x8x128xf32> to vector<2x1x8x128xf32>
    %14 = vector.shape_cast %13 : vector<2x1x8x128xf32> to vector<2x8x128xf32>
    %15 = arith.addf %12, %14 : vector<2x8x128xf32>
    %cst_7 = arith.constant dense<0.000000e+00> : vector<2x8xf32>
    %16 = vector.multi_reduction <add>, %15, %cst_7 [2] : vector<2x8x128xf32> to vector<2x8xf32>
    %17 = vector.shape_cast %16 : vector<2x8xf32> to vector<2x8x1xf32>
    %cst_8 = arith.constant dense<0.000000e+00> : vector<2x1xf32>
    %18 = vector.multi_reduction <add>, %17, %cst_8 [1] : vector<2x8x1xf32> to vector<2x1xf32>
    %c0_9 = arith.constant 0 : index
    %19 = memref.load %arg2[%c0_9] : memref<2xf32, #tpu.memory_space<smem>>
    %20 = vector.broadcast %19 : f32 to vector<2x1xf32>
    %21 = arith.addf %18, %20 : vector<2x1xf32>
    %c0_i32 = arith.constant 0 : i32
    %22 = vector.broadcast %c0_i32 : i32 to vector<2x2xi32>
    %23 = arith.cmpi eq, %1, %22 : vector<2x2xi32>
    %24 = vector.shape_cast %21 : vector<2x1xf32> to vector<2x1xf32>
    %25 = vector.broadcast %24 : vector<2x1xf32> to vector<2x2xf32>
    %26 = arith.select %23, %25, %2 : vector<2x2xi1>, vector<2x2xf32>
    %c1 = arith.constant 1 : index
    %c0_10 = arith.constant 0 : index
    %c0_11 = arith.constant 0 : index
    %c0_12 = arith.constant 0 : index
    %27 = vector.load %arg1[%c1, %c0_10, %c0_11, %c0_12] : memref<2x3x8x128xf32, #tpu.memory_space<vmem>>, vector<1x3x8x128xf32>
    %28 = vector.shape_cast %27 : vector<1x3x8x128xf32> to vector<3x8x128xf32>
    %29 = vector.shape_cast %28 : vector<3x8x128xf32> to vector<1x3x8x128xf32>
    %30 = vector.broadcast %29 : vector<1x3x8x128xf32> to vector<2x3x8x128xf32>
    %31 = arith.mulf %0, %30 : vector<2x3x8x128xf32>
    %32 = vector.extract_strided_slice %31 {offsets = [0, 0, 0, 0], sizes = [2, 1, 8, 128], strides = [1, 1, 1, 1]} : vector<2x3x8x128xf32> to vector<2x1x8x128xf32>
    %33 = vector.shape_cast %32 : vector<2x1x8x128xf32> to vector<2x8x128xf32>
    %34 = vector.extract_strided_slice %31 {offsets = [0, 1, 0, 0], sizes = [2, 1, 8, 128], strides = [1, 1, 1, 1]} : vector<2x3x8x128xf32> to vector<2x1x8x128xf32>
    %35 = vector.shape_cast %34 : vector<2x1x8x128xf32> to vector<2x8x128xf32>
    %36 = arith.addf %33, %35 : vector<2x8x128xf32>
    %37 = vector.extract_strided_slice %31 {offsets = [0, 2, 0, 0], sizes = [2, 1, 8, 128], strides = [1, 1, 1, 1]} : vector<2x3x8x128xf32> to vector<2x1x8x128xf32>
    %38 = vector.shape_cast %37 : vector<2x1x8x128xf32> to vector<2x8x128xf32>
    %39 = arith.addf %36, %38 : vector<2x8x128xf32>
    %cst_13 = arith.constant dense<0.000000e+00> : vector<2x8xf32>
    %40 = vector.multi_reduction <add>, %39, %cst_13 [2] : vector<2x8x128xf32> to vector<2x8xf32>
    %41 = vector.shape_cast %40 : vector<2x8xf32> to vector<2x8x1xf32>
    %cst_14 = arith.constant dense<0.000000e+00> : vector<2x1xf32>
    %42 = vector.multi_reduction <add>, %41, %cst_14 [1] : vector<2x8x1xf32> to vector<2x1xf32>
    %c1_15 = arith.constant 1 : index
    %43 = memref.load %arg2[%c1_15] : memref<2xf32, #tpu.memory_space<smem>>
    %44 = vector.broadcast %43 : f32 to vector<2x1xf32>
    %45 = arith.addf %42, %44 : vector<2x1xf32>
    %c1_i32 = arith.constant 1 : i32
    %46 = vector.broadcast %c1_i32 : i32 to vector<2x2xi32>
    %47 = arith.cmpi eq, %1, %46 : vector<2x2xi32>
    %48 = vector.shape_cast %45 : vector<2x1xf32> to vector<2x1xf32>
    %49 = vector.broadcast %48 : vector<2x1xf32> to vector<2x2xf32>
    %50 = arith.select %47, %49, %26 : vector<2x2xi1>, vector<2x2xf32>
    %cst_16 = arith.constant 0.000000e+00 : f32
    %51 = vector.broadcast %cst_16 : f32 to vector<2x2xf32>
    %52 = arith.maximumf %50, %51 : vector<2x2xf32>
    %c0_17 = arith.constant 0 : index
    %c0_18 = arith.constant 0 : index
    %53 = vector.load %arg3[%c0_17, %c0_18] : memref<2x2xf32, #tpu.memory_space<vmem>>, vector<2x2xf32>
    tpu.vector_store %arg3[%c0_17, %c0_18], %52 {strides = array<i32>} : memref<2x2xf32, #tpu.memory_space<vmem>>, vector<2x2xf32>,
    return
  }
}

</mosaic_0001>

<bundles_post_ra>
// kernel: baseline_forward.1
= control target key start
LH: loop header
LB: loop body
LE: loop exit
PB: predicated region body
PF: predicated region fallthrough
CT: control target
= control target key end

     0   :  { %8 = vsyncpa [#allocation4], 0  ;;  %s251_s0 = inlined_call_operand.vmem [shape: f32[2,3,8,128], index: 0, kind: input, shape index: {}]   ;;  %s252_s1 = inlined_call_operand.vmem [shape: f32[2,3,8,128], index: 1, kind: input, shape index: {}]   ;;  %s253_s2 = inlined_call_operand.vmem [shape: f32[2], index: 2, kind: input, shape index: {}]   ;;  %s254_s3 = inlined_call_operand.hbm [shape: f32[2,2], index: 3, kind: output, shape index: {}]  }
   0x1   :  { %9 = vsyncpa [#allocation3], 0  ;;  %s20_s14 = sshll.u32 %s253_s2, 4  ;;  %s21_s14 = int_to_ptr.vmem [resolvable:$true] %s20_s14 }
   0x2   :  { %s140_s15 = scalar_lea.vmem %s21_s14, 16  ;;  %p145_p1 = scmp.lt.s32.totalorder %s21_s14, %s21_s14 }
   0x3   :  { %p141_p0 = scmp.ne.s32.totalorder %s21_s14, %s140_s15  ;;  %p146_p2 = scmp.lt.s32.totalorder %s140_s15, %s140_s15 }
   0x5   :  { %p147_p3 = por %p146_p2, %p145_p1 }
   0x7   :  { %p148_p4 = pnand %p147_p3, %p141_p0 }
   0x9   :  { %151 = shalt.err (!%p148_p4)
}
   0xa   :  { %s178_s16 = smov [#allocation2]  }
   0xb   :  { %23 = dma.vmem_to_smem %s21_s14, 16, %s178_s16, [#allocation4]  }
   0xc   :  { %174 = dma.done.wait [#allocation4], 16  }
   0xd   :  { %175 = vsyncadd [#allocation4], 4294967280 }
   0xe   :  { %27 = sfence }
   0xf   :  { %v28_v0 = vld [vmem:[%s251_s0] sm:$0xff]  ;;  %v29_v1 = vld [vmem:[%s251_s0 + $0x8] sm:$0xff]  ;;  %v30_v2 = vld [vmem:[%s251_s0 + $0x10] sm:$0xff]  ;;  %v34_v52 = vlaneseq  ;;  %vm72_vm0 = vcmask 1041409   ;;  %s179_s13 = smov [#allocation5]   ;;  %vm117_vm3 = vcmask 9216  }
  0x10   :  { %v134_v3 = vld [vmem:[%s252_s1 + $0x18] sm:$0xff]  ;;  %v135_v4 = vld [vmem:[%s252_s1 + $0x20] sm:$0xff]  ;;  %v136_v5 = vld [vmem:[%s252_s1 + $0x28] sm:$0xff]  ;;  %s125_s14 = sshll.u32 %s179_s13, 4  ;;  %s126_s14 = int_to_ptr.vmem [resolvable:$true] %s125_s14 }
  0x11   :  { %v80_v6 = vmul.f32 %v134_v3, %v28_v0  ;;  %v81_v7 = vmul.f32 %v135_v4, %v29_v1  ;;  %v82_v8 = vmul.f32 %v136_v5, %v30_v2  ;;  %v36_v9 = vld [vmem:[%s252_s1] sm:$0xff]  ;;  %v37_v10 = vld [vmem:[%s252_s1 + $0x8] sm:$0xff]  ;;  %v38_v11 = vld [vmem:[%s252_s1 + $0x10] sm:$0xff]  ;;  %s65_s1 = sld [smem:[#allocation2]]  ;;  %v35_v60 = vand.u32 127, %v34_v52  ;;  %s152_s15 = scalar_lea.vmem %s126_s14, 32 }
  0x12   :  { %v39_v12 = vmul.f32 %v36_v9, %v28_v0  ;;  %v40_v13 = vmul.f32 %v37_v10, %v29_v1  ;;  %v41_v14 = vmul.f32 %v38_v11, %v30_v2  ;;  %v31_v15 = vld [vmem:[%s251_s0 + $0x18] sm:$0xff]  ;;  %v32_v16 = vld [vmem:[%s251_s0 + $0x20] sm:$0xff]  ;;  %v33_v17 = vld [vmem:[%s251_s0 + $0x28] sm:$0xff]  ;;  %s137_s0 = sld [smem:[#allocation2 + $0x1]]  ;;  %p153_p5 = scmp.ne.s32.totalorder %s126_s14, %s152_s15 }
  0x13   :  { %v86_v18 = vadd.f32 %v81_v7, %v80_v6  ;;  %v83_v19 = vmul.f32 %v134_v3, %v31_v15  ;;  %v84_v20 = vmul.f32 %v135_v4, %v32_v16  ;;  %v85_v21 = vmul.f32 %v136_v5, %v33_v17  ;;  %p157_p6 = scmp.lt.s32.totalorder %s126_s14, %s126_s14  ;;  %p158_p7 = scmp.lt.s32.totalorder %s152_s15, %s152_s15 }
  0x14   :  { %v45_v22 = vadd.f32 %v40_v13, %v39_v12  ;;  %v42_v23 = vmul.f32 %v36_v9, %v31_v15  ;;  %v43_v24 = vmul.f32 %v37_v10, %v32_v16  ;;  %v44_v25 = vmul.f32 %v38_v11, %v33_v17 }
  0x15   :  { %v88_v26 = vadd.f32 %v86_v18, %v82_v8  ;;  %v87_v27 = vadd.f32 %v84_v20, %v83_v19  ;;  %vm69_vm1 = vcmp.eq.s32.totalorder %v35_v60, 0  ;;  %vm110_vm2 = vcmp.eq.s32.totalorder %v35_v60, 1  ;;  %p159_p8 = por %p158_p7, %p157_p6 }
  0x16   :  { %v47_v28 = vadd.f32 %v45_v22, %v41_v14  ;;  %v46_v29 = vadd.f32 %v43_v24, %v42_v23 }
  0x17   :  { %90 = vadd.xlane.f32.xlu1 %v88_v26  ;;  %v89_v30 = vadd.f32 %v87_v27, %v85_v21  ;;  %v66_v62 = vstv %s65_s1  ;;  %p160_p9 = pnand %p159_p8, %p153_p5 }
  0x18   :  { %49 = vadd.xlane.f32.xlu0 %v47_v28  ;;  %v48_v31 = vadd.f32 %v46_v29, %v44_v25  ;;  %v107_v58 = vstv %s137_s0 }
  0x1b   :  { %92 = vadd.xlane.f32.xlu1 %v89_v30 }
  0x1c   :  { %51 = vadd.xlane.f32.xlu0 %v48_v31 }
  0xa4   :  { %v91_v32 = vpop.xlane.xlu1 %90 }
  0xa5   :  { %v94_v33 = vrot.slane %v91_v32, 4  ;;  %v50_v34 = vpop.xlane.xlu0 %49 }
  0xa6   :  { %v53_v35 = vrot.slane %v50_v34, 4 }
  0xa7   :  { %v95_v36 = vadd.f32 %v94_v33, %v91_v32 }
  0xa8   :  { %v54_v37 = vadd.f32 %v53_v35, %v50_v34  ;;  %v93_v38 = vpop.xlane.xlu1 %92 }
  0xa9   :  { %v96_v39 = vrot.slane %v95_v36, 2  ;;  %v100_v40 = vrot.slane %v93_v38, 4  ;;  %v52_v41 = vpop.xlane.xlu0 %51 }
  0xaa   :  { %v55_v42 = vrot.slane %v54_v37, 2  ;;  %v59_v43 = vrot.slane %v52_v41, 4 }
  0xab   :  { %v97_v44 = vadd.f32 %v96_v39, %v95_v36  ;;  %v101_v45 = vadd.f32 %v100_v40, %v93_v38 }
  0xac   :  { %v56_v46 = vadd.f32 %v55_v42, %v54_v37  ;;  %v60_v47 = vadd.f32 %v59_v43, %v52_v41 }
  0xad   :  { %v98_v48 = vrot.slane %v97_v44, 1  ;;  %v102_v49 = vrot.slane %v101_v45, 2 }
  0xae   :  { %v57_v50 = vrot.slane %v56_v46, 1  ;;  %v61_v51 = vrot.slane %v60_v47, 2 }
  0xaf   :  { %v103_v53 = vadd.f32 %v102_v49, %v101_v45  ;;  %v99_v55 = vadd.f32 %v98_v48, %v97_v44 }
  0xb0   :  { %v62_v54 = vadd.f32 %v61_v51, %v60_v47  ;;  %v58_v57 = vadd.f32 %v57_v50, %v56_v46 }
  0xb1   :  { %v104_v56 = vrot.slane %v103_v53, 1  ;;  %v108_v0 = vadd.f32 %v107_v58, %v99_v55 }
  0xb2   :  { %v63_v59 = vrot.slane %v62_v54, 1  ;;  %v67_v2 = vadd.f32 %v66_v62, %v58_v57 }
  0xb3   :  { %v105_v61 = vadd.f32 %v104_v56, %v103_v53 }
  0xb4   :  { %v64_v63 = vadd.f32 %v63_v59, %v62_v54 }
  0xb5   :  { %v109_v1 = vadd.f32 %v107_v58, %v105_v61 }
  0xb6   :  { %v68_v3 = vadd.f32 %v66_v62, %v64_v63 }
  0xb7   :  { %v113_v4 = vsel %vm72_vm0, %v109_v1, %v108_v0 }
  0xb8   :  { %v73_v5 = vsel %vm72_vm0, %v68_v3, %v67_v2 }
  0xb9   :  { %v75_v6 = vsel %vm69_vm1, %v73_v5, 0.0 }
  0xba   :  { %v115_v7 = vsel %vm110_vm2, %v113_v4, %v75_v6 }
  0xbb   :  { %v116_v8 = vmax.f32 %v115_v7, 0.0 }
  0xbd   :  { %118 = vst.msk [vmem:[#allocation5] sm:$0x3] %vm117_vm3, %v116_v8 }
  0xbe   :  { %163 = shalt.err (!%p160_p9)
}
  0xbf   :  { %s164_s18 = scalar_lea.hbm %s254_s3, 32 }
  0xc0   :  { %p165_p10 = scmp.ne.s32.totalorder %s254_s3, %s164_s18  ;;  %p168_p11 = scmp.lt.u32.totalorder %s164_s18, %s254_s3 }
  0xc2   :  { %p170_p12 = pnand %p168_p11, %p165_p10 }
  0xc4   :  { %173 = shalt.err (!%p170_p12)
}
  0xc5   :  { %128 = dma.vmem_to_hbm [thread:$0]  %s126_s14, 32, %s254_s3, [#allocation3]  }
  0xc6   :  { %176 = dma.done.wait [#allocation3], 32  }
  0xc7   :  { %177 = vsyncadd [#allocation3], 4294967264 }
  0xc8   :  { %132 = vsyncpa [#allocation3], 1 }
  0xc9   :  { %133 = vsyncpa [#allocation4], 1 }

</bundles_post_ra>
